<compile_context>
chip_gen: v7x
topology: tpu7x:2x2x1
jax: 0.10.0
libtpu: 0.0.40
codegen_flags: <defaults>
</compile_context>

<pallas_src>
import functools

import jax
import jax.numpy as jnp
from jax.experimental import pallas as pl
from jax.experimental.pallas import tpu as pltpu


# ----------------------------- hardware / tiles -----------------------------

def _vmem_capacity_bytes():
    try:
        return int(pltpu.get_tpu_info().vmem_capacity_bytes)
    except Exception:
        return 64 * 1024 * 1024  # conservative fallback (v7x per-TC VMEM)


def _sublane_multiple(dtype):
    itemsize = jnp.dtype(dtype).itemsize
    return max(8, 32 // itemsize)  # f32 -> 8, bf16 -> 16, int8/fp8 -> 32


def _choose_tiles(B, D, dtype, block_budget_override=None):
    """Pick (tile_b, tile_d, vmem_limit_bytes) against the per-chip VMEM budget.

    Mem-bound kernel: per-input-block budget is VMEM/8 (8 MiB on 64 MiB v7x,
    16 MiB on 128 MiB v5e/v6e) so the ~0.35 us per-grid-step pipeline overhead is
    well amortized while 2 inputs x 2 pipeline buffers stay inside the vmem limit.
    `block_budget_override` is a test hook to force multi-step grids at tiny shapes.
    """
    itemsize = jnp.dtype(dtype).itemsize
    sub = _sublane_multiple(dtype)
    vmem_cap = _vmem_capacity_bytes()
    block_budget = (vmem_cap // 8) if block_budget_override is None \
        else int(block_budget_override)
    block_budget = max(block_budget, sub * 128 * itemsize)

    # Feature tile: whole D if it fits at the minimum batch tile; otherwise a
    # 128-multiple tile with a cdiv grid (tail columns masked in-kernel).
    if D * sub * itemsize <= block_budget:
        tile_d = D
    else:
        tile_d = max(128, (block_budget // (sub * itemsize)) // 128 * 128)

    # Batch tile: largest sublane multiple fitting the budget; prefer an EVEN
    # (>= 2) number of batch grid steps so the 'parallel' axis balances across
    # v7x's two TensorCores.
    b_cap = -(-B // sub) * sub
    b_max = min(b_cap, max(sub, (block_budget // (tile_d * itemsize)) // sub * sub))
    cands = list(range(sub, b_max + 1, sub)) or [sub]

    def nsteps(b):
        return -(-B // b)

    even_multi = [b for b in cands if nsteps(b) >= 2 and nsteps(b) % 2 == 0]
    multi = [b for b in cands if nsteps(b) >= 2]
    tile_b = max(even_multi) if even_multi else (max(multi) if multi else max(cands))

    block_bytes = tile_b * tile_d * itemsize
    needed = 4 * block_bytes + 8 * tile_b * 4 + (8 << 20)  # dbl-buffered ins + out + headroom
    vmem_limit = int(min(vmem_cap * 3 // 4, max(needed, 32 << 20)))
    return tile_b, tile_d, vmem_limit


# ------------------------------ fused kernels --------------------------------

def _row_terms(d, c_sq, c_l1):
    """c_sq * sum(d*d, -1) + c_l1 * sum(|d|, -1), shape (rows, 1) float32."""
    acc = jnp.zeros((d.shape[0], 1), jnp.float32)
    if c_sq != 0.0:
        t = jnp.sum(d * d, axis=-1, keepdims=True)
        acc = acc + (t if c_sq == 1.0 else c_sq * t)
    if c_l1 != 0.0:
        t = jnp.sum(jnp.abs(d), axis=-1, keepdims=True)
        acc = acc + (t if c_l1 == 1.0 else c_l1 * t)
    return acc


def _mask_tail_cols(d, D, tile_d, k):
    """Zero columns past the true feature extent on the (partial) tail block."""
    col = jax.lax.broadcasted_iota(jnp.int32, d.shape, 1)
    return jnp.where(col < (D - k * tile_d), d, 0.0)


def _make_fused_kernel(c_sq, c_l1, D, tile_d, mask_tail):
    """grid=(nb, nd): accumulate per-row distance in a VMEM scratch over the feature
    (reduction, 'arbitrary', last) axis; write the output block only on the last step."""
    c_sq = float(c_sq)
    c_l1 = float(c_l1)

    def kernel(x_ref, y_ref, o_ref, acc_ref):
        k = pl.program_id(1)

        @pl.when(k == 0)
        def _init():
            acc_ref[...] = jnp.zeros_like(acc_ref)

        d = x_ref[...].astype(jnp.float32) - y_ref[...].astype(jnp.float32)
        if mask_tail:
            d = _mask_tail_cols(d, D, tile_d, k)
        acc_ref[...] += _row_terms(d, c_sq, c_l1)

        @pl.when(k == pl.num_programs(1) - 1)
        def _finalize():
            o_ref[...] = acc_ref[...]

    return kernel


def _make_partial_kernel(c_sq, c_l1, D, tile_d, mask_tail):
    """grid=(nd,) all-parallel: each feature chunk writes its own partial sum block
    (nb == 1 shapes; keeps both v7x TensorCores streaming HBM)."""
    c_sq = float(c_sq)
    c_l1 = float(c_l1)

    def kernel(x_ref, y_ref, o_ref):
        d = x_ref[...].astype(jnp.float32) - y_ref[...].astype(jnp.float32)
        if mask_tail:
            d = _mask_tail_cols(d, D, tile_d, pl.program_id(0))
        o_ref[...] = _row_terms(d, c_sq, c_l1)[None, :, :]

    return kernel


# --------------------------- cached kernel builder ----------------------------

@functools.lru_cache(maxsize=None)
def _build_fused_call(B, D, dtype, c_sq, c_l1, block_budget_override):
    """Build (once per shape/dtype/coefficient tuple) a jitted fn: (x, y) -> (B,) f32."""
    tile_b, tile_d, vmem_limit = _choose_tiles(B, D, dtype, block_budget_override)
    nb = -(-B // tile_b)
    nd = -(-D // tile_d)
    mask_tail = (D % tile_d) != 0

    if nb == 1 and nd >= 2:
        # Feature-parallel partial sums: (nd, tile_b, 1) output, trivial host-side sum.
        call = pl.pallas_call(
            _make_partial_kernel(c_sq, c_l1, D, tile_d, mask_tail),
            out_shape=jax.ShapeDtypeStruct((nd, tile_b, 1), jnp.float32),
            grid_spec=pltpu.PrefetchScalarGridSpec(
                num_scalar_prefetch=0,
                grid=(nd,),
                in_specs=[
                    pl.BlockSpec((tile_b, tile_d), lambda k: (0, k)),
                    pl.BlockSpec((tile_b, tile_d), lambda k: (0, k)),
                ],
                out_specs=pl.BlockSpec((1, tile_b, 1), lambda k: (k, 0, 0)),
            ),
            compiler_params=pltpu.CompilerParams(
                dimension_semantics=("parallel",),
                vmem_limit_bytes=vmem_limit,
            ),
        )

        def fn(x, y):
            parts = call(x, y)                      # (nd, tile_b, 1)
            return jnp.sum(parts[:, :B, 0], axis=0)  # drop garbage tail rows, reduce chunks

        return jax.jit(fn)

    # Standard path: batch 'parallel' (even step counts preferred), feature
    # 'arbitrary' reduction axis last, VMEM scratch accumulator, last-step store.
    call = pl.pallas_call(
        _make_fused_kernel(c_sq, c_l1, D, tile_d, mask_tail),
        out_shape=jax.ShapeDtypeStruct((B, 1), jnp.float32),
        grid_spec=pltpu.PrefetchScalarGridSpec(
            num_scalar_prefetch=0,
            grid=(nb, nd),
            in_specs=[
                pl.BlockSpec((tile_b, tile_d), lambda i, k: (i, k)),
                pl.BlockSpec((tile_b, tile_d), lambda i, k: (i, k)),
            ],
            out_specs=pl.BlockSpec((tile_b, 1), lambda i, k: (i, 0)),
            scratch_shapes=[pltpu.VMEM((tile_b, 1), jnp.float32)],
        ),
        compiler_params=pltpu.CompilerParams(
            dimension_semantics=("parallel", "arbitrary"),
            vmem_limit_bytes=vmem_limit,
        ),
    )

    def fn(x, y):
        return call(x, y)[:, 0]

    return jax.jit(fn)


def _fused_distance(x, y, c_sq, c_l1, block_budget_override=None):
    """Fused per-row distance over (B, D) inputs -> (B,) float32.  No host-side
    padding: ragged batches use partial tail blocks (garbage rows are discarded)."""
    assert x.shape == y.shape and x.ndim == 2, "metrics expect (batch, feature) inputs"
    B, D = x.shape
    fn = _build_fused_call(
        int(B), int(D), jnp.dtype(x.dtype), float(c_sq), float(c_l1),
        None if block_budget_override is None else int(block_budget_override))
    return fn(x, y)


def _fused_forward(x, y, c_sq, c_l1, dim):
    per_row = _fused_distance(x, y, c_sq, c_l1)
    if dim is None:
        return jnp.sum(per_row)  # (B,) -> scalar writeback is negligible
    assert dim in (-1, 1), "metric reduces over the feature (last) axis"
    return per_row


# --------------------------- Metric class family -----------------------------

class Metric:
    """Abstract metric (mirrors the PyTorch `Metric` nn.Module).

    Composed trees of ScaleMetric / SumMetric over the concrete metrics below are
    flattened into linear coefficients and lowered as ONE fused Pallas pass
    (x and y are read from HBM once instead of once per leaf)."""

    def __call__(self, x, y, dim=None):
        terms = self._linear_terms()
        if terms is not None:
            return _fused_forward(x, y, terms.get("sq", 0.0), terms.get("l1", 0.0), dim)
        return self.forward(x, y, dim=dim)

    # TODO(synk): the base class `Metric.forward` is abstract (`pass`) in PyTorch;
    # there is nothing to lower for it directly, so concrete metrics are supplied.
    def forward(self, x, y, dim=None):
        raise NotImplementedError

    def _linear_terms(self):
        return None  # not fusable by default

    def __add__(self, other):
        return SumMetric(self, other)

    def __rmul__(self, scalar):
        # NOTE: original PyTorch __rmul__ passes ScaleMetric(scalar, self), inconsistent
        # with ScaleMetric.__init__(metric1, factor); argument order fixed here.
        return ScaleMetric(self, scalar)


class ScaleMetric(Metric):
    def __init__(self, metric1, factor):
        self.metric1 = metric1
        self.factor = factor

    def _linear_terms(self):
        inner = self.metric1._linear_terms()
        if inner is None:
            return None
        try:
            f = float(self.factor)
        except Exception:
            return None  # traced / non-scalar factor -> unfused fallback path
        return {k: f * v for k, v in inner.items()}

    def forward(self, x, y, dim=None):
        # Fallback (unfused) path: trivial scalar scale of an already-reduced vector.
        return self.factor * self.metric1(x, y, dim=dim)


class SumMetric(Metric):
    def __init__(self, metric1, metric2):
        self.metric1 = metric1
        self.metric2 = metric2

    def _linear_terms(self):
        t1 = self.metric1._linear_terms()
        t2 = self.metric2._linear_terms()
        if t1 is None or t2 is None:
            return None
        merged = dict(t1)
        for k, v in t2.items():
            merged[k] = merged.get(k, 0.0) + v
        return merged

    def forward(self, x, y, dim=None):
        # Fallback (unfused) path: elementwise add of two reduced vectors.
        return self.metric1(x, y, dim=dim) + self.metric2(x, y, dim=dim)


class SquaredEuclideanMetric(Metric):
    """Concrete metric: sum_d (x - y)^2, reduced in the fused Pallas kernel."""

    def _linear_terms(self):
        return {"sq": 1.0}

    def forward(self, x, y, dim=None):
        return _fused_forward(x, y, 1.0, 0.0, dim)


class ManhattanMetric(Metric):
    """Concrete metric: sum_d |x - y|, reduced in the fused Pallas kernel."""

    def _linear_terms(self):
        return {"l1": 1.0}

    def forward(self, x, y, dim=None):
        return _fused_forward(x, y, 0.0, 1.0, dim)


# --------------------------------- driver ------------------------------------

if __name__ == "__main__":
    key = jax.random.PRNGKey(0)
    kx, ky = jax.random.split(key)

    # 1) Composed metric (2*m1 + m2) flattened into one fused pass, f32.
    B, D = 8, 128
    x = jax.random.normal(kx, (B, D), dtype=jnp.float32)
    y = jax.random.normal(ky, (B, D), dtype=jnp.float32)
    m1 = SquaredEuclideanMetric()
    m2 = ManhattanMetric()
    composed = 2.0 * m1 + m2
    out_dim = composed(x, y, dim=-1)      # (B,)
    out_all = composed(x, y, dim=None)    # scalar
    jax.block_until_ready(out_dim)
    jax.block_until_ready(out_all)
    ref_dim = 2.0 * jnp.sum((x - y) ** 2, axis=-1) + jnp.sum(jnp.abs(x - y), axis=-1)
    ref_all = jnp.sum(ref_dim)
    assert out_dim.shape == (B,)
    assert jnp.allclose(out_dim, ref_dim, rtol=1e-4, atol=1e-4)
    assert jnp.allclose(out_all, ref_all, rtol=1e-4, atol=1e-4)

    # 2) Ragged batch (no host-side pad: partial tail block + out[:B]) in f32.
    Br = 10
    xr = jax.random.normal(kx, (Br, D), dtype=jnp.float32)
    yr = jax.random.normal(ky, (Br, D), dtype=jnp.float32)
    out_r = m1(xr, yr, dim=-1)
    jax.block_until_ready(out_r)
    ref_r = jnp.sum((xr - yr) ** 2, axis=-1)
    assert out_r.shape == (Br,)
    assert jnp.allclose(out_r, ref_r, rtol=1e-4, atol=1e-4)

    # 3) Ragged batch + bfloat16 (16-row sublane tile, partial block, f32 upcast).
    xb = jax.random.normal(kx, (Br, D), dtype=jnp.bfloat16)
    yb = jax.random.normal(ky, (Br, D), dtype=jnp.bfloat16)
    out_b = m1(xb, yb, dim=-1)
    jax.block_until_ready(out_b)
    ref_b = jnp.sum((xb.astype(jnp.float32) - yb.astype(jnp.float32)) ** 2, axis=-1)
    assert out_b.shape == (Br,)
    assert jnp.allclose(out_b, ref_b, rtol=1e-3, atol=1e-3)

    # 4) Non-128-aligned D with a tiny forced block budget: exercises the
    #    multi-feature-step reduction path with in-kernel tail-column masking.
    B2, D2 = 24, 300
    x2 = jax.random.normal(kx, (B2, D2), dtype=jnp.float32)
    y2 = jax.random.normal(ky, (B2, D2), dtype=jnp.float32)
    out2 = _fused_distance(x2, y2, 1.0, 0.5, block_budget_override=4096)
    jax.block_until_ready(out2)
    ref2 = jnp.sum((x2 - y2) ** 2, axis=-1) + 0.5 * jnp.sum(jnp.abs(x2 - y2), axis=-1)
    assert jnp.allclose(out2, ref2, rtol=1e-4, atol=1e-4)

    # 5) Single-batch-tile + multi-feature-step: exercises the feature-PARALLEL
    #    partial-sum path (v7x megacore for tiny batches).
    B3, D3 = 8, 300
    x3 = jax.random.normal(kx, (B3, D3), dtype=jnp.float32)
    y3 = jax.random.normal(ky, (B3, D3), dtype=jnp.float32)
    out3 = _fused_distance(x3, y3, 2.0, 1.0, block_budget_override=4096)
    jax.block_until_ready(out3)
    ref3 = 2.0 * jnp.sum((x3 - y3) ** 2, axis=-1) + jnp.sum(jnp.abs(x3 - y3), axis=-1)
    assert jnp.allclose(out3, ref3, rtol=1e-4, atol=1e-4)

    print("KERNEL_OK")
</pallas_src>

<mosaic_0001>
module attributes {stable_mosaic.version = 11 : i64} {
  func.func @kernel(%arg0: i32, %arg1: i32, %arg2: memref<8x128xf32, #tpu.memory_space<vmem>>, %arg3: memref<8x128xf32, #tpu.memory_space<vmem>>, %arg4: memref<8x1xf32, #tpu.memory_space<vmem>>, %arg5: memref<8x1xf32, #tpu.memory_space<vmem>>) attributes {dimension_semantics = [#tpu.dimension_semantics<parallel>, #tpu.dimension_semantics<arbitrary>], iteration_bounds = array<i64: 1, 1>, scalar_prefetch = 0 : i64, scratch_operands = 1 : i64, tpu.core_type = #tpu.core_type<tc>, window_params = [{transform_indices = @transform_0, window_bounds = array<i64: 8, 128>}, {transform_indices = @transform_1, window_bounds = array<i64: 8, 128>}, {transform_indices = @transform_2, window_bounds = array<i64: 8, 1>}]} {
    %c0_i32 = arith.constant 0 : i32
    %0 = arith.cmpi eq, %arg1, %c0_i32 : i32
    %1 = arith.extui %0 : i1 to i32
    %c0_i32_0 = arith.constant 0 : i32
    %2 = arith.cmpi ne, %1, %c0_i32_0 : i32
    scf.if %2 {
      %cst_13 = arith.constant 0.000000e+00 : f32
      %23 = vector.broadcast %cst_13 : f32 to vector<8x1xf32>
      %c0_14 = arith.constant 0 : index
      %c0_15 = arith.constant 0 : index
      %24 = vector.load %arg5[%c0_14, %c0_15] : memref<8x1xf32, #tpu.memory_space<vmem>>, vector<8x1xf32>
      tpu.vector_store %arg5[%c0_14, %c0_15], %23 {strides = array<i32>} : memref<8x1xf32, #tpu.memory_space<vmem>>, vector<8x1xf32>,
    } else {
    }
    %c0 = arith.constant 0 : index
    %c0_1 = arith.constant 0 : index
    %3 = vector.load %arg2[%c0, %c0_1] : memref<8x128xf32, #tpu.memory_space<vmem>>, vector<8x128xf32>
    %c0_2 = arith.constant 0 : index
    %c0_3 = arith.constant 0 : index
    %4 = vector.load %arg3[%c0_2, %c0_3] : memref<8x128xf32, #tpu.memory_space<vmem>>, vector<8x128xf32>
    %5 = arith.subf %3, %4 : vector<8x128xf32>
    %c0_4 = arith.constant 0 : index
    %c0_5 = arith.constant 0 : index
    %6 = vector.load %arg5[%c0_4, %c0_5] : memref<8x1xf32, #tpu.memory_space<vmem>>, vector<8x1xf32>
    %cst = arith.constant 0.000000e+00 : f32
    %7 = vector.broadcast %cst : f32 to vector<8x1xf32>
    %8 = arith.mulf %5, %5 : vector<8x128xf32>
    %cst_6 = arith.constant dense<0.000000e+00> : vector<8xf32>
    %9 = vector.multi_reduction <add>, %8, %cst_6 [1] : vector<8x128xf32> to vector<8xf32>
    %10 = vector.shape_cast %9 : vector<8xf32> to vector<8x1xf32>
    %cst_7 = arith.constant 2.000000e+00 : f32
    %11 = vector.broadcast %cst_7 : f32 to vector<8x1xf32>
    %12 = arith.mulf %11, %10 : vector<8x1xf32>
    %13 = arith.addf %7, %12 : vector<8x1xf32>
    %14 = math.absf %5 : vector<8x128xf32>
    %cst_8 = arith.constant dense<0.000000e+00> : vector<8xf32>
    %15 = vector.multi_reduction <add>, %14, %cst_8 [1] : vector<8x128xf32> to vector<8xf32>
    %16 = vector.shape_cast %15 : vector<8xf32> to vector<8x1xf32>
    %17 = arith.addf %13, %16 : vector<8x1xf32>
    %18 = arith.addf %6, %17 : vector<8x1xf32>
    %c0_9 = arith.constant 0 : index
    %c0_10 = arith.constant 0 : index
    %19 = vector.load %arg5[%c0_9, %c0_10] : memref<8x1xf32, #tpu.memory_space<vmem>>, vector<8x1xf32>
    tpu.vector_store %arg5[%c0_9, %c0_10], %18 {strides = array<i32>} : memref<8x1xf32, #tpu.memory_space<vmem>>, vector<8x1xf32>,
    %c0_i32_11 = arith.constant 0 : i32
    %20 = arith.cmpi eq, %arg1, %c0_i32_11 : i32
    %21 = arith.extui %20 : i1 to i32
    %c0_i32_12 = arith.constant 0 : i32
    %22 = arith.cmpi ne, %21, %c0_i32_12 : i32
    scf.if %22 {
      %c0_13 = arith.constant 0 : index
      %c0_14 = arith.constant 0 : index
      %23 = vector.load %arg5[%c0_13, %c0_14] : memref<8x1xf32, #tpu.memory_space<vmem>>, vector<8x1xf32>
      %c0_15 = arith.constant 0 : index
      %c0_16 = arith.constant 0 : index
      %24 = vector.load %arg4[%c0_15, %c0_16] : memref<8x1xf32, #tpu.memory_space<vmem>>, vector<8x1xf32>
      tpu.vector_store %arg4[%c0_15, %c0_16], %23 {strides = array<i32>} : memref<8x1xf32, #tpu.memory_space<vmem>>, vector<8x1xf32>,
    } else {
    }
    return
  }
  func.func @transform_0(%arg0: i32, %arg1: i32) -> (i32, i32) {
    %c0_i32 = arith.constant 0 : i32
    return %arg0, %arg1 : i32, i32
  }
  func.func @transform_1(%arg0: i32, %arg1: i32) -> (i32, i32) {
    %c0_i32 = arith.constant 0 : i32
    return %arg0, %arg1 : i32, i32
  }
  func.func @transform_2(%arg0: i32, %arg1: i32) -> (i32, i32) {
    %c0_i32 = arith.constant 0 : i32
    %c0_i32_0 = arith.constant 0 : i32
    return %arg0, %c0_i32 : i32, i32
  }
}

</mosaic_0001>

<bundles_post_ra>
// kernel: fn.1
= control target key start
LH: loop header
LB: loop body
LE: loop exit
PB: predicated region body
PF: predicated region fallthrough
CT: control target
= control target key end

     0   :  { %7 = vsyncpa [#allocation4], 0  ;;  %s167_s0 = inlined_call_operand.hbm [shape: f32[8,128], index: 0, kind: input, shape index: {}]   ;;  %s168_s1 = inlined_call_operand.hbm [shape: f32[8,128], index: 1, kind: input, shape index: {}]   ;;  %s169_s2 = inlined_call_operand.vmem [shape: f32[8,1], index: 2, kind: output, shape index: {}]  }
   0x1   :  { %8 = vsyncpa [#allocation6], 0  ;;  %s119_s9 = smov [#allocation3]   ;;  %s120_s11 = smov [#allocation5]  }
   0x2   :  { %s15_s10 = sshll.u32 %s119_s9, 4  ;;  %s25_s12 = sshll.u32 %s120_s11, 4  ;;  %s16_s10 = int_to_ptr.vmem [resolvable:$true] %s15_s10  ;;  %s26_s12 = int_to_ptr.vmem [resolvable:$true] %s25_s12 }
   0x3   :  { %s71_s15 = scalar_lea.hbm %s167_s0, 128 }
   0x4   :  { %p72_p0 = scmp.ne.s32.totalorder %s167_s0, %s71_s15  ;;  %p75_p1 = scmp.lt.u32.totalorder %s71_s15, %s167_s0 }
   0x6   :  { %p77_p2 = pnand %p75_p1, %p72_p0 }
   0x8   :  { %80 = shalt.err (!%p77_p2)
}
   0x9   :  { %s81_s20 = scalar_lea.vmem %s16_s10, 128  ;;  %p86_p4 = scmp.lt.s32.totalorder %s16_s10, %s16_s10 }
   0xa   :  { %p82_p3 = scmp.ne.s32.totalorder %s16_s10, %s81_s20  ;;  %p87_p5 = scmp.lt.s32.totalorder %s81_s20, %s81_s20 }
   0xc   :  { %p88_p6 = por %p87_p5, %p86_p4 }
   0xe   :  { %p89_p7 = pnand %p88_p6, %p82_p3 }
  0x10   :  { %92 = shalt.err (!%p89_p7)
}
  0x11   :  { %18 = dma.hbm_to_vmem [thread:$0]  %s167_s0, 128, %s16_s10, [#allocation4]  }
  0x12   :  { %s93_s25 = scalar_lea.hbm %s168_s1, 128 }
  0x13   :  { %p94_p8 = scmp.ne.s32.totalorder %s168_s1, %s93_s25  ;;  %p97_p9 = scmp.lt.u32.totalorder %s93_s25, %s168_s1 }
  0x15   :  { %p99_p10 = pnand %p97_p9, %p94_p8 }
  0x17   :  { %102 = shalt.err (!%p99_p10)
}
  0x18   :  { %s103_s30 = scalar_lea.vmem %s26_s12, 128  ;;  %p108_p12 = scmp.lt.s32.totalorder %s26_s12, %s26_s12 }
  0x19   :  { %p104_p11 = scmp.ne.s32.totalorder %s26_s12, %s103_s30  ;;  %p109_p13 = scmp.lt.s32.totalorder %s103_s30, %s103_s30 }
  0x1b   :  { %p110_p0 = por %p109_p13, %p108_p12 }
  0x1d   :  { %p111_p1 = pnand %p110_p0, %p104_p11 }
  0x1f   :  { %114 = shalt.err (!%p111_p1)
}
  0x20   :  { %28 = dma.hbm_to_vmem [thread:$0]  %s168_s1, 128, %s26_s12, [#allocation6]  }
  0x21   :  { %115 = dma.done.wait [#allocation4], 128  }
  0x22   :  { %116 = vsyncadd [#allocation4], 4294967168 }
  0x23   :  { %117 = dma.done.wait [#allocation6], 128  }
  0x24   :  { %118 = vsyncadd [#allocation6], 4294967168  ;;  %vm39_vm0 = vcmask 7168   ;;  %v121_v0 = vmov 0.0   ;;  %v41_v1 = vld [vmem:[#allocation3] sm:$0xff]  ;;  %v42_v2 = vld [vmem:[#allocation5] sm:$0xff] }
  0x25   :  { %40 = vst.msk [vmem:[#allocation2] sm:$0xff] %vm39_vm0, %v121_v0  ;;  %v43_v3 = vsub.f32 %v41_v1, %v42_v2 }
  0x27   :  { %v45_v4 = vmul.f32 %v43_v3, %v43_v3  ;;  %v50_v5 = vand.u32 2147483647, %v43_v3 }
  0x29   :  { %46 = vadd.xlane.f32.xlu0 %v45_v4 }
  0x2c   :  { %v44_v9 = vld [vmem:[#allocation2] sm:$0xff] }
  0x2d   :  { %51 = vadd.xlane.f32.xlu0 %v50_v5 }
  0xb6   :  { %v47_v6 = vpop.xlane.xlu0 %46 }
  0xb7   :  { %v48_v7 = vmul.f32 2.0, %v47_v6 }
  0xba   :  { %v52_v8 = vpop.xlane.xlu0 %51 }
  0xbb   :  { %v53_v10 = vadd.f32 %v52_v8, %v48_v7 }
  0xbd   :  { %v54_v11 = vadd.f32 %v53_v10, %v44_v9 }
  0xbf   :  { %56 = vst.msk [vmem:[#allocation2] sm:$0xff] %vm39_vm0, %v54_v11 }
  0xc6   :  { %v60_v12 = vld [vmem:[#allocation2] sm:$0xff] }
  0xc7   :  { %61 = vst.msk [vmem:[%s169_s2] sm:$0xff] %vm39_vm0, %v60_v12 }
  0xc8   :  { %66 = vsyncpa [#allocation4], 1 }
  0xc9   :  { %67 = vsyncpa [#allocation6], 1 }

</bundles_post_ra>
